<compile_context>
chip_gen: v7x
topology: tpu7x:2x2x1
jax: 0.10.0
libtpu: 0.0.40
codegen_flags: <defaults>
</compile_context>

<pallas_src>
import jax
import jax.numpy as jnp
from jax.experimental import pallas as pl
from jax.experimental.pallas import tpu as pltpu

H1 = 256      # first hidden width
H2 = 64       # true second hidden width
H2_PAD = 128  # lane-dense padded width for layer 2


def mlp_kernel(x_ref, w1_ref, b1_ref, w2_ref, b2_ref, w3_ref, b3_ref, o_ref):
    # x_ref: (tm, D) f32 | w1: (D,256) f32 | b1: (1,256) f32
    # w2: (256,128) f32 zero-padded        | b2: (1,128) f32 zero-padded
    # w3: (1,128) f32 zero-padded row      | b3: (1,) f32 in SMEM | o: (tm,1) f32
    x = x_ref[...]

    # Layer 1: f32 MXU matmul with f32 accumulation.
    h1 = jnp.dot(x, w1_ref[...], preferred_element_type=jnp.float32) + b1_ref[...]
    h1 = jnp.maximum(h1, 0.0)

    # Layer 2: result is lane-dense (128 cols; cols 64..127 are zero-padded).
    h2 = jnp.dot(h1, w2_ref[...], preferred_element_type=jnp.float32) + b2_ref[...]
    h2 = jnp.maximum(h2, 0.0)                          # (tm, 128) f32

    # Layer 3 (output width 1): VPU multiply + lane reduction instead of an N=1 MXU op.
    # Padded columns of h2 / w3 are zero, so they contribute nothing.
    out = jnp.sum(h2 * w3_ref[...], axis=-1, keepdims=True) + b3_ref[0]
    o_ref[...] = out.astype(o_ref.dtype)


def _round_up(n, m):
    return ((n + m - 1) // m) * m


def _choose_tile(B, D, tm_max):
    """Pick the batch tile: big enough to amortize per-grid-step overhead, small enough
    to fit the v5e 16 MiB scoped-VMEM default, and (when B allows) small enough that the
    grid has >= 2 blocks so v7x's two TensorCores both get work."""
    # Per-row VMEM: double-buffered f32 x row + f32 h1/h2 temporaries + out row.
    per_row = 2 * D * 4 + (H1 + H2_PAD) * 4 + 2 * 4
    # Double-buffered resident weights/biases (w1, w2 dominate).
    weights = 2 * 4 * (D * H1 + H1 * H2_PAD + H1 + 2 * H2_PAD)
    budget = 12 * 1024 * 1024          # headroom under v5e's 16 MiB scoped default
    cap = max(8, ((budget - weights) // per_row) // 8 * 8)
    if B <= 8:
        half = _round_up(max(B, 1), 8)
    else:
        half = _round_up(pl.cdiv(B, 2), 8)   # target >= 2 grid blocks
    return max(8, min(tm_max, cap, half))


def surface_model_forward(x, params, *, tm=1024):
    """x: (B, input_dim) float32. params: output of prepare_kernel_params()."""
    B, D = x.shape
    tm_eff = _choose_tile(B, D, tm)
    grid = (pl.cdiv(B, tm_eff),)   # ragged tail handled by Pallas boundary masking

    out = pl.pallas_call(
        mlp_kernel,
        out_shape=jax.ShapeDtypeStruct((B, 1), jnp.float32),
        grid_spec=pltpu.PrefetchScalarGridSpec(
            num_scalar_prefetch=0,
            grid=grid,
            in_specs=[
                pl.BlockSpec((tm_eff, D), lambda i: (i, 0)),        # x tile over batch
                pl.BlockSpec((D, H1), lambda i: (0, 0)),            # w1 (resident)
                pl.BlockSpec((1, H1), lambda i: (0, 0)),            # b1
                pl.BlockSpec((H1, H2_PAD), lambda i: (0, 0)),       # w2 (zero-padded)
                pl.BlockSpec((1, H2_PAD), lambda i: (0, 0)),        # b2 (zero-padded)
                pl.BlockSpec((1, H2_PAD), lambda i: (0, 0)),        # w3 row (zero-padded)
                pl.BlockSpec(memory_space=pltpu.MemorySpace.SMEM),  # b3 scalar
            ],
            out_specs=pl.BlockSpec((tm_eff, 1), lambda i: (i, 0)),
        ),
        compiler_params=pltpu.CompilerParams(
            # Batch axis is embarrassingly parallel -> shards across v7x's 2 TCs.
            dimension_semantics=("parallel",),
        ),
    )(x, params["w1"], params["b1"], params["w2"], params["b2"],
      params["w3"], params["b3"])

    return out


def init_params(key, input_dim):
    """nn.Linear-style init (uniform +/- 1/sqrt(fan_in)); weights stored transposed
    as (in_features, out_features), all float32 (reference layout)."""
    def linear(k, fan_in, fan_out):
        kw, kb = jax.random.split(k)
        bound = 1.0 / jnp.sqrt(fan_in)
        w = jax.random.uniform(kw, (fan_in, fan_out), jnp.float32, -bound, bound)
        b = jax.random.uniform(kb, (1, fan_out), jnp.float32, -bound, bound)
        return w, b

    k1, k2, k3 = jax.random.split(key, 3)
    w1, b1 = linear(k1, input_dim, H1)
    w2, b2 = linear(k2, H1, H2)
    w3, b3 = linear(k3, H2, 1)
    return {"w1": w1, "b1": b1, "w2": w2, "b2": b2, "w3": w3, "b3": b3}


def prepare_kernel_params(p):
    """Kernel-side layouts (all f32): layer-2 zero-padded to 128 lanes, layer-3 weight as
    a (1,128) zero-padded row, b3 as a (1,) SMEM scalar."""
    w2_pad = jnp.zeros((H1, H2_PAD), jnp.float32).at[:, :H2].set(p["w2"])
    b2_pad = jnp.zeros((1, H2_PAD), jnp.float32).at[:, :H2].set(p["b2"])
    w3_row = jnp.zeros((1, H2_PAD), jnp.float32).at[0, :H2].set(p["w3"][:, 0])
    return {
        "w1": p["w1"],
        "b1": p["b1"],
        "w2": w2_pad,
        "b2": b2_pad,
        "w3": w3_row,
        "b3": p["b3"].reshape(1).astype(jnp.float32),   # (1,) scalar for SMEM
    }


def reference_forward(x, p):
    h1 = jnp.maximum(x @ p["w1"] + p["b1"], 0.0)
    h2 = jnp.maximum(h1 @ p["w2"] + p["b2"], 0.0)
    return h2 @ p["w3"] + p["b3"]


if __name__ == "__main__":
    key = jax.random.PRNGKey(0)
    kx, kp = jax.random.split(key)

    # Ragged batch exercises the boundary-masking path; tile chooser gives 2 blocks.
    batch, input_dim = 300, 32
    x = jax.random.normal(kx, (batch, input_dim), jnp.float32)
    params = init_params(kp, input_dim)
    kparams = prepare_kernel_params(params)

    out = surface_model_forward(x, kparams)
    out = jax.block_until_ready(out)

    ref = reference_forward(x, params)
    assert out.shape == (batch, 1)
    max_err = float(jnp.max(jnp.abs(out - ref)))
    assert jnp.allclose(out, ref, atol=2e-2, rtol=2e-2), (
        f"mismatch vs reference (max abs err {max_err})")
    print("KERNEL_OK")
</pallas_src>

<mosaic_0001>
module attributes {stable_mosaic.version = 11 : i64} {
  func.func @mlp_kernel(%arg0: i32, %arg1: memref<152x32xf32, #tpu.memory_space<vmem>>, %arg2: memref<32x256xf32, #tpu.memory_space<vmem>>, %arg3: memref<1x256xf32, #tpu.memory_space<vmem>>, %arg4: memref<256x128xf32, #tpu.memory_space<vmem>>, %arg5: memref<1x128xf32, #tpu.memory_space<vmem>>, %arg6: memref<1x128xf32, #tpu.memory_space<vmem>>, %arg7: memref<1xf32, #tpu.memory_space<smem>>, %arg8: memref<152x1xf32, #tpu.memory_space<vmem>>) attributes {dimension_semantics = [#tpu.dimension_semantics<parallel>], iteration_bounds = array<i64: 2>, scalar_prefetch = 0 : i64, scratch_operands = 0 : i64, tpu.core_type = #tpu.core_type<tc>, window_params = [{transform_indices = @transform_0, window_bounds = array<i64: 152, 32>}, {pipeline_mode = #tpu.pipeline_mode<synchronous>, transform_indices = @transform_1, window_bounds = array<i64: 32, 256>}, {pipeline_mode = #tpu.pipeline_mode<synchronous>, transform_indices = @transform_2, window_bounds = array<i64: 1, 256>}, {pipeline_mode = #tpu.pipeline_mode<synchronous>, transform_indices = @transform_3, window_bounds = array<i64: 256, 128>}, {pipeline_mode = #tpu.pipeline_mode<synchronous>, transform_indices = @transform_4, window_bounds = array<i64: 1, 128>}, {pipeline_mode = #tpu.pipeline_mode<synchronous>, transform_indices = @transform_5, window_bounds = array<i64: 1, 128>}, {transform_indices = @transform_6, window_bounds = array<i64: 1>}, {transform_indices = @transform_7, window_bounds = array<i64: 152, 1>}]} {
    %c0 = arith.constant 0 : index
    %c0_0 = arith.constant 0 : index
    %0 = vector.load %arg1[%c0, %c0_0] : memref<152x32xf32, #tpu.memory_space<vmem>>, vector<152x32xf32>
    %c0_1 = arith.constant 0 : index
    %c0_2 = arith.constant 0 : index
    %1 = vector.load %arg2[%c0_1, %c0_2] : memref<32x256xf32, #tpu.memory_space<vmem>>, vector<32x256xf32>
    %cst = arith.constant dense<0.000000e+00> : vector<152x256xf32>
    %2 = tpu.matmul %0, %1, %cst {dimension_numbers = #tpu.dot_dimension_numbers<[1], [0], [0], [1], [0, 0, 1, 1], [], []>} : vector<152x32xf32>, vector<32x256xf32>, vector<152x256xf32> -> vector<152x256xf32>
    %c0_3 = arith.constant 0 : index
    %c0_4 = arith.constant 0 : index
    %3 = vector.load %arg3[%c0_3, %c0_4] : memref<1x256xf32, #tpu.memory_space<vmem>>, vector<1x256xf32>
    %4 = vector.broadcast %3 : vector<1x256xf32> to vector<152x256xf32>
    %5 = arith.addf %2, %4 : vector<152x256xf32>
    %cst_5 = arith.constant 0.000000e+00 : f32
    %6 = vector.broadcast %cst_5 : f32 to vector<152x256xf32>
    %7 = arith.maximumf %5, %6 : vector<152x256xf32>
    %c0_6 = arith.constant 0 : index
    %c0_7 = arith.constant 0 : index
    %8 = vector.load %arg4[%c0_6, %c0_7] : memref<256x128xf32, #tpu.memory_space<vmem>>, vector<256x128xf32>
    %cst_8 = arith.constant dense<0.000000e+00> : vector<152x128xf32>
    %9 = tpu.matmul %7, %8, %cst_8 {dimension_numbers = #tpu.dot_dimension_numbers<[1], [0], [0], [1], [0, 0, 1, 1], [], []>} : vector<152x256xf32>, vector<256x128xf32>, vector<152x128xf32> -> vector<152x128xf32>
    %c0_9 = arith.constant 0 : index
    %c0_10 = arith.constant 0 : index
    %10 = vector.load %arg5[%c0_9, %c0_10] : memref<1x128xf32, #tpu.memory_space<vmem>>, vector<1x128xf32>
    %11 = vector.broadcast %10 : vector<1x128xf32> to vector<152x128xf32>
    %12 = arith.addf %9, %11 : vector<152x128xf32>
    %cst_11 = arith.constant 0.000000e+00 : f32
    %13 = vector.broadcast %cst_11 : f32 to vector<152x128xf32>
    %14 = arith.maximumf %12, %13 : vector<152x128xf32>
    %c0_12 = arith.constant 0 : index
    %c0_13 = arith.constant 0 : index
    %15 = vector.load %arg6[%c0_12, %c0_13] : memref<1x128xf32, #tpu.memory_space<vmem>>, vector<1x128xf32>
    %16 = vector.broadcast %15 : vector<1x128xf32> to vector<152x128xf32>
    %17 = arith.mulf %14, %16 : vector<152x128xf32>
    %cst_14 = arith.constant dense<0.000000e+00> : vector<152xf32>
    %18 = vector.multi_reduction <add>, %17, %cst_14 [1] : vector<152x128xf32> to vector<152xf32>
    %19 = vector.shape_cast %18 : vector<152xf32> to vector<152x1xf32>
    %c0_15 = arith.constant 0 : index
    %20 = memref.load %arg7[%c0_15] : memref<1xf32, #tpu.memory_space<smem>>
    %21 = vector.broadcast %20 : f32 to vector<152x1xf32>
    %22 = arith.addf %19, %21 : vector<152x1xf32>
    %c0_16 = arith.constant 0 : index
    %c0_17 = arith.constant 0 : index
    %23 = vector.load %arg8[%c0_16, %c0_17] : memref<152x1xf32, #tpu.memory_space<vmem>>, vector<152x1xf32>
    tpu.vector_store %arg8[%c0_16, %c0_17], %22 {strides = array<i32>} : memref<152x1xf32, #tpu.memory_space<vmem>>, vector<152x1xf32>,
    return
  }
  func.func @transform_0(%arg0: i32) -> (i32, i32) {
    %c0_i32 = arith.constant 0 : i32
    %c0_i32_0 = arith.constant 0 : i32
    return %arg0, %c0_i32 : i32, i32
  }
  func.func @transform_1(%arg0: i32) -> (i32, i32) {
    %c0_i32 = arith.constant 0 : i32
    %c0_i32_0 = arith.constant 0 : i32
    %c0_i32_1 = arith.constant 0 : i32
    return %c0_i32, %c0_i32_0 : i32, i32
  }
  func.func @transform_2(%arg0: i32) -> (i32, i32) {
    %c0_i32 = arith.constant 0 : i32
    %c0_i32_0 = arith.constant 0 : i32
    %c0_i32_1 = arith.constant 0 : i32
    return %c0_i32, %c0_i32_0 : i32, i32
  }
  func.func @transform_3(%arg0: i32) -> (i32, i32) {
    %c0_i32 = arith.constant 0 : i32
    %c0_i32_0 = arith.constant 0 : i32
    %c0_i32_1 = arith.constant 0 : i32
    return %c0_i32, %c0_i32_0 : i32, i32
  }
  func.func @transform_4(%arg0: i32) -> (i32, i32) {
    %c0_i32 = arith.constant 0 : i32
    %c0_i32_0 = arith.constant 0 : i32
    %c0_i32_1 = arith.constant 0 : i32
    return %c0_i32, %c0_i32_0 : i32, i32
  }
  func.func @transform_5(%arg0: i32) -> (i32, i32) {
    %c0_i32 = arith.constant 0 : i32
    %c0_i32_0 = arith.constant 0 : i32
    %c0_i32_1 = arith.constant 0 : i32
    return %c0_i32, %c0_i32_0 : i32, i32
  }
  func.func @transform_6(%arg0: i32) -> i32 {
    %c0_i32 = arith.constant 0 : i32
    %c0_i32_0 = arith.constant 0 : i32
    return %c0_i32 : i32
  }
  func.func @transform_7(%arg0: i32) -> (i32, i32) {
    %c0_i32 = arith.constant 0 : i32
    %c0_i32_0 = arith.constant 0 : i32
    return %arg0, %c0_i32 : i32, i32
  }
}

</mosaic_0001>

<bundles_post_ra>
// kernel: tpu_custom_call.1
= control target key start
LH: loop header
LB: loop body
LE: loop exit
PB: predicated region body
PF: predicated region fallthrough
CT: control target
= control target key end

     0   :  { %s1157_s26 = smov 0   ;;  %s1525_s0 = inlined_call_operand.vmem [shape: f32[300,32], index: 0, kind: input, shape index: {}]   ;;  %s1526_s1 = inlined_call_operand.vmem [shape: f32[32,256], index: 1, kind: input, shape index: {}]   ;;  %s1527_s2 = inlined_call_operand.vmem [shape: f32[1,256], index: 2, kind: input, shape index: {}]   ;;  %s1528_s3 = inlined_call_operand.vmem [shape: f32[256,128], index: 3, kind: input, shape index: {}]   ;;  %s1529_s4 = inlined_call_operand.vmem [shape: f32[1,128], index: 4, kind: input, shape index: {}]   ;;  %s1530_s5 = inlined_call_operand.vmem [shape: f32[1,128], index: 5, kind: input, shape index: {}]   ;;  %s1531_s6 = inlined_call_operand.<no memory space> [shape: f32[1], index: 6, kind: input, shape index: {}]   ;;  %s1532_s7 = inlined_call_operand.vmem [shape: f32[300,1], index: 7, kind: output, shape index: {}]  }
   0x1   :  { %12 = sst [smem:[#allocation2]] %s1531_s6 }
   0x2 LB: > { %s976_s27 = sadd.s32 4294967295, %s1110_s26   ;;  %p980_p0 = scmp.ge.s32.totalorder %s1110_s26, 1  ;;  %s1110_s26 = sphi %s1157_s26, %s18_s26  }
   0x3   : > { %p239_p1 = scmp.lt.s32.totalorder %s1110_s26, 3 }
   0x5   : > { %p240_p2 = pnand %p980_p0, %p239_p1 }
   0x6   : > { %v303_v0 = vld [vmem:[%s1526_s1 + $0x8] sm:$0xff] (!%p240_p2)  ;;  %v305_v1 = vld [vmem:[%s1526_s1 + $0x18] sm:$0xff] (!%p240_p2)  ;;  %v302_v2 = vld [vmem:[%s1526_s1] sm:$0xff] (!%p240_p2)  ;;  %s271_s10 = smul.u32 (!%p240_p2), 19, %s976_s27  ;;  %v1112_v7 = vmov (!%p240_p2), 0.0   ;;  %v1113_v13 = vmov (!%p240_p2), 0.0|0.0  }
   0x7   : > { %243 = sbr.rel (%p240_p2) target bundleno = 671 (0x29f), region = 48  ;;  %v1006_v3 = vpack.c.bf16 (!%p240_p2), %v305_v1, %v303_v0  ;;  %v304_v4 = vld [vmem:[%s1526_s1 + $0x10] sm:$0xff] (!%p240_p2)  ;;  %v307_v5 = vld [vmem:[%s1526_s1 + $0x28] sm:$0xff] (!%p240_p2)  ;;  %v309_v6 = vld [vmem:[%s1526_s1 + $0x38] sm:$0xff] (!%p240_p2)  ;;  %444 = vmatprep.mubr.f32.mxu0 (!%p240_p2), %v1112_v7  ;;  %1062 = vmatprep.subr.bf16.mxu1 (!%p240_p2), %v1113_v13  ;;  %vm322_vm0 = vcmask (!%p240_p2), 261120   ;;  %s879_s12 = sld [smem:[#allocation2]] (!%p240_p2) }
   0x8   : > { %v1008_v8 = vpack.c.bf16 (!%p240_p2), %v304_v4, %v302_v2  ;;  %v1010_v9 = vpack.c.bf16 (!%p240_p2), %v309_v6, %v307_v5  ;;  %v306_v10 = vld [vmem:[%s1526_s1 + $0x20] sm:$0xff] (!%p240_p2)  ;;  %v308_v11 = vld [vmem:[%s1526_s1 + $0x30] sm:$0xff] (!%p240_p2)  ;;  %p272_p3 = scmp.lt.s32.totalorder (!%p240_p2), %s271_s10, 37  ;;  %v598_v14 = vld [vmem:[%s1528_s3 + $0x8] sm:$0xff] (!%p240_p2)  ;;  %vm900_vm1 = vcmask (!%p240_p2), 7168  }
   0x9   : > { %v597_v12 = vld [vmem:[%s1528_s3] sm:$0xff] (!%p240_p2)  ;;  %1007 = vmatprep.subr.bf16.mxu0 (!%p240_p2), %v1006_v3  ;;  %v1012_v15 = vpack.c.bf16 (!%p240_p2), %v308_v11, %v306_v10  ;;  %v599_v17 = vld [vmem:[%s1528_s3 + $0x10] sm:$0xff] (!%p240_p2)  ;;  %v600_v18 = vld [vmem:[%s1528_s3 + $0x18] sm:$0xff] (!%p240_p2) }
   0xa   : > { %1009 = vmatpush1.bf16.msra.mxu0 (!%p240_p2), %v1008_v8  ;;  %v1015_v16 = vpack.c.bf16 (!%p240_p2), %v598_v14, %v597_v12  ;;  %v1018_v20 = vpack.c.bf16 (!%p240_p2), %v600_v18, %v599_v17  ;;  %v601_v21 = vld [vmem:[%s1528_s3 + $0x20] sm:$0xff] (!%p240_p2)  ;;  %v602_v22 = vld [vmem:[%s1528_s3 + $0x28] sm:$0xff] (!%p240_p2)  ;;  %v603_v25 = vld [vmem:[%s1528_s3 + $0x30] sm:$0xff] (!%p240_p2)  ;;  %v312_v18 = vlaneseq (!%p240_p2) }
   0xb   : > { %1011 = vmatprep.subr.bf16.mxu0 (!%p240_p2), %v1010_v9  ;;  %v1021_v24 = vpack.c.bf16 (!%p240_p2), %v602_v22, %v601_v21  ;;  %v604_v26 = vld [vmem:[%s1528_s3 + $0x38] sm:$0xff] (!%p240_p2)  ;;  %v605_v29 = vld [vmem:[%s1528_s3 + $0x40] sm:$0xff] (!%p240_p2)  ;;  %v606_v30 = vld [vmem:[%s1528_s3 + $0x48] sm:$0xff] (!%p240_p2) }
   0xc   : > { %1078 = vmatpush1.bf16.msra.mxu1 (!%p240_p2), %v1015_v16  ;;  %v1024_v28 = vpack.c.bf16 (!%p240_p2), %v604_v26, %v603_v25  ;;  %v1027_v32 = vpack.c.bf16 (!%p240_p2), %v606_v30, %v605_v29  ;;  %v607_v33 = vld [vmem:[%s1528_s3 + $0x50] sm:$0xff] (!%p240_p2)  ;;  %v608_v34 = vld [vmem:[%s1528_s3 + $0x58] sm:$0xff] (!%p240_p2)  ;;  %v609_v37 = vld [vmem:[%s1528_s3 + $0x60] sm:$0xff] (!%p240_p2) }
   0xd   : > { %1063 = vmatprep.subr.bf16.mxu1 (!%p240_p2), %v1113_v13  ;;  %v1030_v36 = vpack.c.bf16 (!%p240_p2), %v608_v34, %v607_v33  ;;  %v610_v38 = vld [vmem:[%s1528_s3 + $0x68] sm:$0xff] (!%p240_p2)  ;;  %v611_v41 = vld [vmem:[%s1528_s3 + $0x70] sm:$0xff] (!%p240_p2)  ;;  %v612_v42 = vld [vmem:[%s1528_s3 + $0x78] sm:$0xff] (!%p240_p2) }
   0xe   : > { %s1534_s10 = smov (!%p272_p3, %s271_s10), 37  ;;  %1013 = vmatpush1.bf16.msra.mxu0 %v1012_v15  ;;  %v1033_v40 = vpack.c.bf16 %v610_v38, %v609_v37  ;;  %v1036_v44 = vpack.c.bf16 %v612_v42, %v611_v41  ;;  %v613_v45 = vld [vmem:[%s1528_s3 + $0x80] sm:$0xff]  ;;  %v614_v46 = vld [vmem:[%s1528_s3 + $0x88] sm:$0xff]  ;;  %v615_v49 = vld [vmem:[%s1528_s3 + $0x90] sm:$0xff] }
   0xf   : > { %s981_s6 = sshll.u32 %s1534_s10, 3  ;;  %1014 = vmatprep.subr.bf16.mxu0 %v1113_v13  ;;  %v1039_v48 = vpack.c.bf16 %v614_v46, %v613_v45  ;;  %v616_v50 = vld [vmem:[%s1528_s3 + $0x98] sm:$0xff]  ;;  %v617_v53 = vld [vmem:[%s1528_s3 + $0xa0] sm:$0xff]  ;;  %v618_v54 = vld [vmem:[%s1528_s3 + $0xa8] sm:$0xff] }
  0x10   : > { %s1211_s9 = scalar_lea.vmem %s1525_s0, %s981_s6  ;;  %1079 = vmatpush1.bf16.msra.mxu1 %v1018_v20  ;;  %v1042_v52 = vpack.c.bf16 %v616_v50, %v615_v49  ;;  %v1045_v56 = vpack.c.bf16 %v618_v54, %v617_v53  ;;  %v619_v57 = vld [vmem:[%s1528_s3 + $0xb0] sm:$0xff]  ;;  %v620_v58 = vld [vmem:[%s1528_s3 + $0xb8] sm:$0xff]  ;;  %v621_v61 = vld [vmem:[%s1528_s3 + $0xc0] sm:$0xff]  ;;  %s1482_s15 = scalar_lea.vmem %s1532_s7, %s981_s6 }
  0x11   : > { %v283_v19 = vld [vmem:[%s1211_s9] sm:$0xff]  ;;  %1064 = vmatprep.subr.bf16.mxu1 %v1113_v13  ;;  %v284_v23 = vld [vmem:[%s1211_s9 + $0x8] sm:$0xff]  ;;  %v285_v27 = vld [vmem:[%s1211_s9 + $0x10] sm:$0xff]  ;;  %v1048_v60 = vpack.c.bf16 %v620_v58, %v619_v57 }
  0x12   : > { %983 = vmatmul.mubr.msk.f32.vlgmr.msra.gmra.mrb[0].mxu0 %vm322_vm0, %v283_v19  ;;  %v286_v31 = vld [vmem:[%s1211_s9 + $0x18] sm:$0xff]  ;;  %v287_v35 = vld [vmem:[%s1211_s9 + $0x20] sm:$0xff]  ;;  %v288_v39 = vld [vmem:[%s1211_s9 + $0x28] sm:$0xff]  ;;  %v313_v19 = vshrl.u32 %v312_v18, 7 }
  0x13   : > { %450 = vmatprep.mubr.f32.mxu0 %v1112_v7  ;;  %1016 = vmatpush1.bf16.msra.mxu0 %v1015_v16  ;;  %v289_v43 = vld [vmem:[%s1211_s9 + $0x30] sm:$0xff]  ;;  %v290_v47 = vld [vmem:[%s1211_s9 + $0x38] sm:$0xff]  ;;  %v291_v51 = vld [vmem:[%s1211_s9 + $0x40] sm:$0xff] }
  0x14   : > { %1017 = vmatprep.subr.bf16.mxu0 %v1113_v13  ;;  %1080 = vmatpush1.bf16.msra.mxu1 %v1021_v24  ;;  %v292_v55 = vld [vmem:[%s1211_s9 + $0x48] sm:$0xff]  ;;  %v293_v59 = vld [vmem:[%s1211_s9 + $0x50] sm:$0xff]  ;;  %v294_v63 = vld [vmem:[%s1211_s9 + $0x58] sm:$0xff]  ;;  %v318_v22 = vsub.s32 1, %v313_v19 }
  0x15   : > { %1065 = vmatprep.subr.bf16.mxu1 %v1113_v13  ;;  %v622_v62 = vld [vmem:[%s1528_s3 + $0xc8] sm:$0xff]  ;;  %v623_v1 = vld [vmem:[%s1528_s3 + $0xd0] sm:$0xff]  ;;  %v624_v2 = vld [vmem:[%s1528_s3 + $0xd8] sm:$0xff] }
  0x16   : > { %984 = vmatmul.mubr.msk.f32.gmra.mrb[2].mxu0 %vm322_vm0, %v284_v23  ;;  %v1051_v0 = vpack.c.bf16 %v622_v62, %v621_v61  ;;  %v295_v3 = vld [vmem:[%s1211_s9 + $0x60] sm:$0xff]  ;;  %v1054_v4 = vpack.c.bf16 %v624_v2, %v623_v1  ;;  %v296_v5 = vld [vmem:[%s1211_s9 + $0x68] sm:$0xff]  ;;  %v297_v6 = vld [vmem:[%s1211_s9 + $0x70] sm:$0xff] }
  0x17   : > { %456 = vmatprep.mubr.f32.mxu0 %v1112_v7  ;;  %1019 = vmatpush1.bf16.msra.mxu0 %v1018_v20  ;;  %v298_v8 = vld [vmem:[%s1211_s9 + $0x78] sm:$0xff]  ;;  %v299_v9 = vld [vmem:[%s1211_s9 + $0x80] sm:$0xff]  ;;  %v300_v10 = vld [vmem:[%s1211_s9 + $0x88] sm:$0xff]  ;;  %v314_v20 = vsub.s32 0, %v313_v19 }
  0x18   : > { %1020 = vmatprep.subr.bf16.mxu0 %v1113_v13  ;;  %1081 = vmatpush1.bf16.msra.mxu1 %v1024_v28  ;;  %v301_v11 = vld [vmem:[%s1211_s9 + $0x90] sm:$0xff]  ;;  %v625_v12 = vld [vmem:[%s1528_s3 + $0xe0] sm:$0xff]  ;;  %v626_v14 = vld [vmem:[%s1528_s3 + $0xe8] sm:$0xff] }
  0x19   : > { %1066 = vmatprep.subr.bf16.mxu1 %v1113_v13  ;;  %v1057_v15 = vpack.c.bf16 %v626_v14, %v625_v12  ;;  %v628_v16 = vld [vmem:[%s1528_s3 + $0xf8] sm:$0xff]  ;;  %v310_v21 = vld [vmem:[%s1527_s2] sm:$0x3] }
  0x1a   : > { %985 = vmatmul.mubr.msk.f32.gmra.mrb[4].mxu0 %vm322_vm0, %v285_v27  ;;  %v1387_v23 = vrot.slane %v310_v21, %v314_v20 }
  0x1b   : > { %462 = vmatprep.mubr.f32.mxu0 %v1112_v7  ;;  %1022 = vmatpush1.bf16.msra.mxu0 %v1021_v24  ;;  %v1389_v24 = vrot.slane %v310_v21, %v318_v22 }
  0x1c   : > { %1023 = vmatprep.subr.bf16.mxu0 %v1113_v13  ;;  %1082 = vmatpush1.bf16.msra.mxu1 %v1027_v32 }
  0x1d   : > { %1067 = vmatprep.subr.bf16.mxu1 %v1113_v13 }
  0x1e   : > { %986 = vmatmul.mubr.msk.f32.gmra.mrb[6].mxu0 %vm322_vm0, %v286_v31 }
  0x1f   : > { %468 = vmatprep.mubr.f32.mxu0 %v1112_v7  ;;  %1025 = vmatpush1.bf16.msra.mxu0 %v1024_v28 }
  0x20   : > { %1026 = vmatprep.subr.bf16.mxu0 %v1113_v13  ;;  %1083 = vmatpush1.bf16.msra.mxu1 %v1030_v36 }
  0x21   : > { %1068 = vmatprep.subr.bf16.mxu1 %v1113_v13 }
  0x22   : > { %987 = vmatmul.mubr.msk.f32.gmra.mrb[8].mxu0 %vm322_vm0, %v287_v35 }
  0x23   : > { %474 = vmatprep.mubr.f32.mxu0 %v1112_v7  ;;  %1028 = vmatpush1.bf16.msra.mxu0 %v1027_v32 }
  0x24   : > { %1029 = vmatprep.subr.bf16.mxu0 %v1113_v13  ;;  %1084 = vmatpush1.bf16.msra.mxu1 %v1033_v40 }
  0x25   : > { %1069 = vmatprep.subr.bf16.mxu1 %v1113_v13 }
  0x26   : > { %988 = vmatmul.mubr.msk.f32.gmra.mrb[10].mxu0 %vm322_vm0, %v288_v39 }
  0x27   : > { %480 = vmatprep.mubr.f32.mxu0 %v1112_v7  ;;  %1031 = vmatpush1.bf16.msra.mxu0 %v1030_v36 }
  0x28   : > { %1032 = vmatprep.subr.bf16.mxu0 %v1113_v13  ;;  %1085 = vmatpush1.bf16.msra.mxu1 %v1036_v44 }
  0x29   : > { %1070 = vmatprep.subr.bf16.mxu1 %v1113_v13 }
  0x2a   : > { %989 = vmatmul.mubr.msk.f32.gmra.mrb[12].mxu0 %vm322_vm0, %v289_v43 }
  0x2b   : > { %486 = vmatprep.mubr.f32.mxu0 %v1112_v7  ;;  %1034 = vmatpush1.bf16.msra.mxu0 %v1033_v40 }
  0x2c   : > { %1035 = vmatprep.subr.bf16.mxu0 %v1113_v13  ;;  %1086 = vmatpush1.bf16.msra.mxu1 %v1039_v48 }
  0x2d   : > { %1071 = vmatprep.subr.bf16.mxu1 %v1113_v13 }
  0x2e   : > { %990 = vmatmul.mubr.msk.f32.gmra.mrb[14].mxu0 %vm322_vm0, %v290_v47 }
  0x2f   : > { %492 = vmatprep.mubr.f32.mxu0 %v1112_v7  ;;  %1037 = vmatpush1.bf16.msra.mxu0 %v1036_v44 }
  0x30   : > { %1038 = vmatprep.subr.bf16.mxu0 %v1113_v13  ;;  %1087 = vmatpush1.bf16.msra.mxu1 %v1042_v52 }
  0x31   : > { %1072 = vmatprep.subr.bf16.mxu1 %v1113_v13 }
  0x32   : > { %991 = vmatmul.mubr.msk.f32.gmra.mrb[16].mxu0 %vm322_vm0, %v291_v51 }
  0x33   : > { %498 = vmatprep.mubr.f32.mxu0 %v1112_v7  ;;  %1040 = vmatpush1.bf16.msra.mxu0 %v1039_v48 }
  0x34   : > { %1041 = vmatprep.subr.bf16.mxu0 %v1113_v13  ;;  %1088 = vmatpush1.bf16.msra.mxu1 %v1045_v56 }
  0x35   : > { %1073 = vmatprep.subr.bf16.mxu1 %v1113_v13 }
  0x36   : > { %992 = vmatmul.mubr.msk.f32.gmra.mrb[18].mxu0 %vm322_vm0, %v292_v55 }
  0x37   : > { %504 = vmatprep.mubr.f32.mxu0 %v1112_v7  ;;  %1043 = vmatpush1.bf16.msra.mxu0 %v1042_v52 }
  0x38   : > { %1044 = vmatprep.subr.bf16.mxu0 %v1113_v13  ;;  %1089 = vmatpush1.bf16.msra.mxu1 %v1048_v60 }
  0x39   : > { %1074 = vmatprep.subr.bf16.mxu1 %v1113_v13 }
  0x3a   : > { %993 = vmatmul.mubr.msk.f32.gmra.mrb[20].mxu0 %vm322_vm0, %v293_v59 }
  0x3b   : > { %510 = vmatprep.mubr.f32.mxu0 %v1112_v7  ;;  %1046 = vmatpush1.bf16.msra.mxu0 %v1045_v56 }
  0x3c   : > { %1047 = vmatprep.subr.bf16.mxu0 %v1113_v13  ;;  %1090 = vmatpush1.bf16.msra.mxu1 %v1051_v0 }
  0x3d   : > { %1075 = vmatprep.subr.bf16.mxu1 %v1113_v13 }
  0x3e   : > { %994 = vmatmul.mubr.msk.f32.gmra.mrb[22].mxu0 %vm322_vm0, %v294_v63 }
  0x3f   : > { %516 = vmatprep.mubr.f32.mxu0 %v1112_v7  ;;  %1049 = vmatpush1.bf16.msra.mxu0 %v1048_v60 }
  0x40   : > { %1050 = vmatprep.subr.bf16.mxu0 %v1113_v13  ;;  %1091 = vmatpush1.bf16.msra.mxu1 %v1054_v4 }
  0x41   : > { %1076 = vmatprep.subr.bf16.mxu1 %v1113_v13 }
  0x42   : > { %995 = vmatmul.mubr.msk.f32.gmra.mrb[24].mxu0 %vm322_vm0, %v295_v3 }
  0x43   : > { %522 = vmatprep.mubr.f32.mxu0 %v1112_v7  ;;  %1052 = vmatpush1.bf16.msra.mxu0 %v1051_v0 }
  0x44   : > { %1053 = vmatprep.subr.bf16.mxu0 %v1113_v13  ;;  %1092 = vmatpush1.bf16.msra.mxu1 %v1057_v15 }
  0x45   : > { %1077 = vmatprep.subr.bf16.mxu1 %v1113_v13 }
  0x46   : > { %996 = vmatmul.mubr.msk.f32.gmra.mrb[26].mxu0 %vm322_vm0, %v296_v5 }
  0x47   : > { %528 = vmatprep.mubr.f32.mxu0 %v1112_v7  ;;  %1055 = vmatpush1.bf16.msra.mxu0 %v1054_v4 }
  0x48   : > { %1056 = vmatprep.subr.bf16.mxu0 %v1113_v13 }
  0x4a   : > { %997 = vmatmul.mubr.msk.f32.gmra.mrb[28].mxu0 %vm322_vm0, %v297_v6 }
  0x4b   : > { %534 = vmatprep.mubr.f32.mxu0 %v1112_v7  ;;  %1058 = vmatpush1.bf16.msra.mxu0 %v1057_v15 }
  0x4c   : > { %1059 = vmatprep.subr.bf16.mxu0 %v1113_v13 }
  0x4e   : > { %998 = vmatmul.mubr.msk.f32.gmra.mrb[30].mxu0 %vm322_vm0, %v298_v8 }
  0x4f   : > { %540 = vmatprep.mubr.f32.mxu0 %v1112_v7 }
  0x52   : > { %999 = vmatmul.mubr.msk.f32.gmra.mrb[32].mxu0 %vm322_vm0, %v299_v9 }
  0x53   : > { %546 = vmatprep.mubr.f32.mxu0 %v1112_v7 }
  0x56   : > { %1000 = vmatmul.mubr.msk.f32.gmra.mrb[34].mxu0 %vm322_vm0, %v300_v10 }
  0x57   : > { %552 = vmatprep.mubr.f32.mxu0 %v1112_v7  ;;  %v627_v7 = vld [vmem:[%s1528_s3 + $0xf0] sm:$0xff] }
  0x58   : > { %v1060_v17 = vpack.c.bf16 %v628_v16, %v627_v7 }
  0x5a   : > { %1001 = vmatmul.mubr.msk.f32.gmra.mrb[36].mxu0 %vm322_vm0, %v301_v11  ;;  %1093 = vmatpush1.bf16.msra.mxu1 %v1060_v17 }
  0x5b   : > { %1061 = vmatpush1.bf16.msra.mxu0 %v1060_v17 }
  0xe5   : > { %v446_v25 = vpop.f32.mrb[0].mxu0 }
  0xe6   : > { %v447_v26 = vadd.f32 %v446_v25, %v1387_v23  ;;  %v448_v27 = vpop.f32.mrb[1].mxu0 }
  0xe7   : > { %v449_v13 = vadd.f32 %v448_v27, %v1389_v24 }
  0xe8   : > { %v559_v30 = vmax.f32 %v447_v26, 0.0 }
  0xe9   : > { %v560_v28 = vmax.f32 %v449_v13, 0.0  ;;  %v452_v29 = vpop.f32.mrb[2].mxu0 }
  0xea   : > { %v453_v31 = vadd.f32 %v452_v29, %v1387_v23  ;;  %v454_v32 = vpop.f32.mrb[3].mxu0 }
  0xeb   : > { %v455_v33 = vadd.f32 %v454_v32, %v1389_v24  ;;  %700 = vmatprep.mubr.f32.mxu0 %v560_v28 }
  0xec   : > { %701 = vmatmul.mubr.f32.vlgmr.msra.gmra.mrb[38].mxu0 %v559_v30  ;;  %v561_v36 = vmax.f32 %v453_v31, 0.0 }
  0xed   : > { %v562_v34 = vmax.f32 %v455_v33, 0.0  ;;  %v458_v35 = vpop.f32.mrb[4].mxu0 }
  0xee   : > { %v459_v37 = vadd.f32 %v458_v35, %v1387_v23  ;;  %v460_v38 = vpop.f32.mrb[5].mxu0 }
  0xef   : > { %v461_v39 = vadd.f32 %v460_v38, %v1389_v24  ;;  %705 = vmatprep.mubr.f32.mxu0 %v562_v34 }
  0xf0   : > { %706 = vmatmul.mubr.f32.gmra.mrb[40].mxu0 %v561_v36  ;;  %v563_v42 = vmax.f32 %v459_v37, 0.0 }
  0xf1   : > { %v564_v40 = vmax.f32 %v461_v39, 0.0  ;;  %v464_v41 = vpop.f32.mrb[6].mxu0 }
  0xf2   : > { %v465_v43 = vadd.f32 %v464_v41, %v1387_v23  ;;  %v466_v44 = vpop.f32.mrb[7].mxu0 }
  0xf3   : > { %v467_v45 = vadd.f32 %v466_v44, %v1389_v24  ;;  %710 = vmatprep.mubr.f32.mxu0 %v564_v40 }
  0xf4   : > { %711 = vmatmul.mubr.f32.gmra.mrb[42].mxu0 %v563_v42  ;;  %v565_v48 = vmax.f32 %v465_v43, 0.0 }
  0xf5   : > { %v566_v46 = vmax.f32 %v467_v45, 0.0  ;;  %v470_v47 = vpop.f32.mrb[8].mxu0 }
  0xf6   : > { %v471_v49 = vadd.f32 %v470_v47, %v1387_v23  ;;  %v472_v50 = vpop.f32.mrb[9].mxu0 }
  0xf7   : > { %v473_v51 = vadd.f32 %v472_v50, %v1389_v24  ;;  %715 = vmatprep.mubr.f32.mxu0 %v566_v46 }
  0xf8   : > { %716 = vmatmul.mubr.f32.gmra.mrb[44].mxu0 %v565_v48  ;;  %v567_v54 = vmax.f32 %v471_v49, 0.0 }
  0xf9   : > { %v568_v52 = vmax.f32 %v473_v51, 0.0  ;;  %v476_v53 = vpop.f32.mrb[10].mxu0 }
  0xfa   : > { %v477_v55 = vadd.f32 %v476_v53, %v1387_v23  ;;  %v478_v56 = vpop.f32.mrb[11].mxu0 }
  0xfb   : > { %v479_v57 = vadd.f32 %v478_v56, %v1389_v24  ;;  %720 = vmatprep.mubr.f32.mxu0 %v568_v52 }
  0xfc   : > { %721 = vmatmul.mubr.f32.gmra.mrb[46].mxu0 %v567_v54  ;;  %v569_v60 = vmax.f32 %v477_v55, 0.0 }
  0xfd   : > { %v570_v58 = vmax.f32 %v479_v57, 0.0  ;;  %v482_v59 = vpop.f32.mrb[12].mxu0 }
  0xfe   : > { %v483_v61 = vadd.f32 %v482_v59, %v1387_v23  ;;  %v484_v62 = vpop.f32.mrb[13].mxu0 }
  0xff   : > { %v485_v63 = vadd.f32 %v484_v62, %v1389_v24  ;;  %725 = vmatprep.mubr.f32.mxu0 %v570_v58 }
 0x100   : > { %726 = vmatmul.mubr.f32.gmra.mrb[48].mxu0 %v569_v60  ;;  %v571_v2 = vmax.f32 %v483_v61, 0.0 }
 0x101   : > { %v572_v0 = vmax.f32 %v485_v63, 0.0  ;;  %v488_v1 = vpop.f32.mrb[14].mxu0 }
 0x102   : > { %v489_v3 = vadd.f32 %v488_v1, %v1387_v23  ;;  %v490_v4 = vpop.f32.mrb[15].mxu0 }
 0x103   : > { %730 = vmatprep.mubr.f32.mxu0 %v572_v0  ;;  %v491_v5 = vadd.f32 %v490_v4, %v1389_v24 }
 0x104   : > { %731 = vmatmul.mubr.f32.gmra.mrb[50].mxu0 %v571_v2  ;;  %v573_v9 = vmax.f32 %v489_v3, 0.0 }
 0x105   : > { %v494_v6 = vpop.f32.mrb[16].mxu0  ;;  %v574_v8 = vmax.f32 %v491_v5, 0.0 }
 0x106   : > { %v495_v10 = vadd.f32 %v494_v6, %v1387_v23  ;;  %v496_v11 = vpop.f32.mrb[17].mxu0 }
 0x107   : > { %v497_v12 = vadd.f32 %v496_v11, %v1389_v24  ;;  %735 = vmatprep.mubr.f32.mxu1 %v574_v8 }
 0x108   : > { %736 = vmatmul.mubr.f32.vlgmr.msra.gmra.mrb[0].mxu1 %v573_v9  ;;  %v575_v7 = vmax.f32 %v495_v10, 0.0 }
 0x109   : > { %v576_v14 = vmax.f32 %v497_v12, 0.0  ;;  %v500_v15 = vpop.f32.mrb[18].mxu0 }
 0x10a   : > { %v501_v16 = vadd.f32 %v500_v15, %v1387_v23  ;;  %v502_v17 = vpop.f32.mrb[19].mxu0 }
 0x10b   : > { %v503_v18 = vadd.f32 %v502_v17, %v1389_v24  ;;  %740 = vmatprep.mubr.f32.mxu1 %v576_v14  ;;  %v1432_v14 = vld [vmem:[%s1529_s4] ss:$0 sm:$0xff] }
 0x10c   : > { %741 = vmatmul.mubr.f32.gmra.mrb[2].mxu1 %v575_v7  ;;  %v577_v21 = vmax.f32 %v501_v16, 0.0 }
 0x10d   : > { %v578_v19 = vmax.f32 %v503_v18, 0.0  ;;  %v506_v20 = vpop.f32.mrb[20].mxu0 }
 0x10e   : > { %v507_v22 = vadd.f32 %v506_v20, %v1387_v23  ;;  %v508_v25 = vpop.f32.mrb[21].mxu0 }
 0x10f   : > { %v509_v26 = vadd.f32 %v508_v25, %v1389_v24  ;;  %745 = vmatprep.mubr.f32.mxu1 %v578_v19 }
 0x110   : > { %746 = vmatmul.mubr.f32.gmra.mrb[4].mxu1 %v577_v21  ;;  %v579_v28 = vmax.f32 %v507_v22, 0.0 }
 0x111   : > { %v580_v27 = vmax.f32 %v509_v26, 0.0  ;;  %v512_v13 = vpop.f32.mrb[22].mxu0 }
 0x112   : > { %v513_v29 = vadd.f32 %v512_v13, %v1387_v23  ;;  %v514_v30 = vpop.f32.mrb[23].mxu0 }
 0x113   : > { %v515_v31 = vadd.f32 %v514_v30, %v1389_v24  ;;  %750 = vmatprep.mubr.f32.mxu1 %v580_v27 }
 0x114   : > { %751 = vmatmul.mubr.f32.gmra.mrb[6].mxu1 %v579_v28  ;;  %v581_v34 = vmax.f32 %v513_v29, 0.0 }
 0x115   : > { %v582_v32 = vmax.f32 %v515_v31, 0.0  ;;  %v518_v33 = vpop.f32.mrb[24].mxu0 }
 0x116   : > { %v519_v35 = vadd.f32 %v518_v33, %v1387_v23  ;;  %v520_v36 = vpop.f32.mrb[25].mxu0 }
 0x117   : > { %v521_v37 = vadd.f32 %v520_v36, %v1389_v24  ;;  %755 = vmatprep.mubr.f32.mxu1 %v582_v32 }
 0x118   : > { %756 = vmatmul.mubr.f32.gmra.mrb[8].mxu1 %v581_v34  ;;  %v583_v40 = vmax.f32 %v519_v35, 0.0 }
 0x119   : > { %v584_v38 = vmax.f32 %v521_v37, 0.0  ;;  %v524_v39 = vpop.f32.mrb[26].mxu0 }
 0x11a   : > { %v525_v41 = vadd.f32 %v524_v39, %v1387_v23  ;;  %v526_v42 = vpop.f32.mrb[27].mxu0 }
 0x11b   : > { %v527_v43 = vadd.f32 %v526_v42, %v1389_v24  ;;  %760 = vmatprep.mubr.f32.mxu1 %v584_v38 }
 0x11c   : > { %761 = vmatmul.mubr.f32.gmra.mrb[10].mxu1 %v583_v40  ;;  %v585_v46 = vmax.f32 %v525_v41, 0.0 }
 0x11d   : > { %v586_v44 = vmax.f32 %v527_v43, 0.0  ;;  %v530_v45 = vpop.f32.mrb[28].mxu0 }
 0x11e   : > { %v531_v47 = vadd.f32 %v530_v45, %v1387_v23  ;;  %v532_v48 = vpop.f32.mrb[29].mxu0 }
 0x11f   : > { %v533_v49 = vadd.f32 %v532_v48, %v1389_v24  ;;  %765 = vmatprep.mubr.f32.mxu1 %v586_v44 }
 0x120   : > { %766 = vmatmul.mubr.f32.gmra.mrb[12].mxu1 %v585_v46  ;;  %v587_v52 = vmax.f32 %v531_v47, 0.0 }
 0x121   : > { %v588_v50 = vmax.f32 %v533_v49, 0.0  ;;  %v536_v51 = vpop.f32.mrb[30].mxu0 }
 0x122   : > { %v537_v53 = vadd.f32 %v536_v51, %v1387_v23  ;;  %v538_v54 = vpop.f32.mrb[31].mxu0 }
 0x123   : > { %v539_v55 = vadd.f32 %v538_v54, %v1389_v24  ;;  %770 = vmatprep.mubr.f32.mxu1 %v588_v50 }
 0x124   : > { %771 = vmatmul.mubr.f32.gmra.mrb[14].mxu1 %v587_v52  ;;  %v589_v58 = vmax.f32 %v537_v53, 0.0 }
 0x125   : > { %v590_v56 = vmax.f32 %v539_v55, 0.0  ;;  %v542_v57 = vpop.f32.mrb[32].mxu0 }
 0x126   : > { %v543_v59 = vadd.f32 %v542_v57, %v1387_v23  ;;  %v544_v60 = vpop.f32.mrb[33].mxu0 }
 0x127   : > { %v545_v61 = vadd.f32 %v544_v60, %v1389_v24  ;;  %775 = vmatprep.mubr.f32.mxu1 %v590_v56 }
 0x128   : > { %776 = vmatmul.mubr.f32.gmra.mrb[16].mxu1 %v589_v58  ;;  %v591_v0 = vmax.f32 %v543_v59, 0.0 }
 0x129   : > { %v592_v62 = vmax.f32 %v545_v61, 0.0  ;;  %v548_v63 = vpop.f32.mrb[34].mxu0 }
 0x12a   : > { %v549_v1 = vadd.f32 %v548_v63, %v1387_v23  ;;  %v550_v2 = vpop.f32.mrb[35].mxu0 }
 0x12b   : > { %v551_v3 = vadd.f32 %v550_v2, %v1389_v24  ;;  %780 = vmatprep.mubr.f32.mxu1 %v592_v62 }
 0x12c   : > { %781 = vmatmul.mubr.f32.gmra.mrb[18].mxu1 %v591_v0  ;;  %v593_v6 = vmax.f32 %v549_v1, 0.0 }
 0x12d   : > { %v594_v4 = vmax.f32 %v551_v3, 0.0  ;;  %v554_v5 = vpop.f32.mrb[36].mxu0 }
 0x12e   : > { %v555_v8 = vadd.f32 %v554_v5, %v1387_v23  ;;  %v556_v9 = vpop.f32.mrb[37].mxu0  ;;  %v1438_v23 = vld [vmem:[%s1530_s5] ss:$0 sm:$0xff] }
 0x12f   : > { %v557_v10 = vadd.f32 %v556_v9, %v1389_v24  ;;  %785 = vmatprep.mubr.f32.mxu1 %v594_v4 }
 0x130   : > { %786 = vmatmul.mubr.f32.gmra.mrb[20].mxu1 %v593_v6  ;;  %v595_v12 = vmax.f32 %v555_v8, 0.0 }
 0x131   : > { %v596_v11 = vmax.f32 %v557_v10, 0.0 }
 0x133   : > { %790 = vmatprep.mubr.f32.mxu1 %v596_v11 }
 0x134   : > { %791 = vmatmul.mubr.f32.gmra.mrb[22].mxu1 %v595_v12 }
 0x1bf   : > { %v702_v15 = vpop.f32.mrb[38].mxu0 }
 0x1c0   : > { %v703_v7 = vadd.f32 %v1432_v14, %v702_v15  ;;  %v704_v16 = vpop.f32.mrb[39].mxu0 }
 0x1c2   : > { %v796_v24 = vmax.f32 %v703_v7, 0.0 }
 0x1c3   : > { %v707_v17 = vpop.f32.mrb[40].mxu0 }
 0x1c4   : > { %v708_v18 = vadd.f32 %v1432_v14, %v707_v17  ;;  %v709_v19 = vpop.f32.mrb[41].mxu0  ;;  %v822_v20 = vmul.f32 %v1438_v23, %v796_v24 }
 0x1c6   : > { %v797_v21 = vmax.f32 %v708_v18, 0.0  ;;  %841 = vadd.xlane.f32.xlu0 %v822_v20 }
 0x1c7   : > { %v712_v22 = vpop.f32.mrb[42].mxu0 }
 0x1c8   : > { %v713_v25 = vadd.f32 %v1432_v14, %v712_v22  ;;  %v714_v26 = vpop.f32.mrb[43].mxu0  ;;  %v823_v27 = vmul.f32 %v1438_v23, %v797_v21 }
 0x1ca   : > { %v798_v13 = vmax.f32 %v713_v25, 0.0  ;;  %843 = vadd.xlane.f32.xlu0 %v823_v27 }
 0x1cb   : > { %v717_v28 = vpop.f32.mrb[44].mxu0 }
 0x1cc   : > { %v718_v29 = vadd.f32 %v1432_v14, %v717_v28  ;;  %v719_v30 = vpop.f32.mrb[45].mxu0  ;;  %v824_v31 = vmul.f32 %v1438_v23, %v798_v13 }
 0x1ce   : > { %v799_v32 = vmax.f32 %v718_v29, 0.0  ;;  %845 = vadd.xlane.f32.xlu1 %v824_v31 }
 0x1cf   : > { %v722_v33 = vpop.f32.mrb[46].mxu0 }
 0x1d0   : > { %v723_v34 = vadd.f32 %v1432_v14, %v722_v33  ;;  %v724_v35 = vpop.f32.mrb[47].mxu0  ;;  %v825_v36 = vmul.f32 %v1438_v23, %v799_v32 }
 0x1d2   : > { %v800_v37 = vmax.f32 %v723_v34, 0.0  ;;  %847 = vadd.xlane.f32.xlu1 %v825_v36 }
 0x1d3   : > { %v727_v38 = vpop.f32.mrb[48].mxu0 }
 0x1d4   : > { %v728_v39 = vadd.f32 %v1432_v14, %v727_v38  ;;  %v729_v40 = vpop.f32.mrb[49].mxu0  ;;  %v826_v41 = vmul.f32 %v1438_v23, %v800_v37 }
 0x1d6   : > { %v801_v42 = vmax.f32 %v728_v39, 0.0  ;;  %849 = vadd.xlane.f32.xlu0 %v826_v41 }
 0x1d7   : > { %v732_v43 = vpop.f32.mrb[50].mxu0 }
 0x1d8   : > { %v733_v44 = vadd.f32 %v1432_v14, %v732_v43  ;;  %v734_v45 = vpop.f32.mrb[51].mxu0  ;;  %v827_v46 = vmul.f32 %v1438_v23, %v801_v42 }
 0x1da   : > { %v802_v47 = vmax.f32 %v733_v44, 0.0  ;;  %851 = vadd.xlane.f32.xlu1 %v827_v46 }
 0x1db   : > { %v737_v48 = vpop.f32.mrb[0].mxu1 }
 0x1dc   : > { %v738_v49 = vadd.f32 %v1432_v14, %v737_v48  ;;  %v739_v50 = vpop.f32.mrb[1].mxu1  ;;  %v828_v51 = vmul.f32 %v1438_v23, %v802_v47  ;;  %v880_v47 = vstv %s879_s12 }
 0x1de   : > { %v803_v52 = vmax.f32 %v738_v49, 0.0  ;;  %853 = vadd.xlane.f32.xlu0 %v828_v51 }
 0x1df   : > { %v742_v53 = vpop.f32.mrb[2].mxu1 }
 0x1e0   : > { %v743_v54 = vadd.f32 %v1432_v14, %v742_v53  ;;  %v744_v55 = vpop.f32.mrb[3].mxu1  ;;  %v829_v56 = vmul.f32 %v1438_v23, %v803_v52 }
 0x1e2   : > { %v804_v57 = vmax.f32 %v743_v54, 0.0  ;;  %855 = vadd.xlane.f32.xlu1 %v829_v56 }
 0x1e3   : > { %v747_v58 = vpop.f32.mrb[4].mxu1 }
 0x1e4   : > { %v748_v59 = vadd.f32 %v1432_v14, %v747_v58  ;;  %v749_v60 = vpop.f32.mrb[5].mxu1  ;;  %v830_v61 = vmul.f32 %v1438_v23, %v804_v57 }
 0x1e6   : > { %v805_v62 = vmax.f32 %v748_v59, 0.0  ;;  %857 = vadd.xlane.f32.xlu0 %v830_v61 }
 0x1e7   : > { %v752_v63 = vpop.f32.mrb[6].mxu1 }
 0x1e8   : > { %v753_v0 = vadd.f32 %v1432_v14, %v752_v63  ;;  %v754_v1 = vpop.f32.mrb[7].mxu1  ;;  %v831_v2 = vmul.f32 %v1438_v23, %v805_v62 }
 0x1ea   : > { %v806_v3 = vmax.f32 %v753_v0, 0.0  ;;  %859 = vadd.xlane.f32.xlu1 %v831_v2 }
 0x1eb   : > { %v757_v4 = vpop.f32.mrb[8].mxu1 }
 0x1ec   : > { %v758_v5 = vadd.f32 %v1432_v14, %v757_v4  ;;  %v759_v6 = vpop.f32.mrb[9].mxu1  ;;  %v832_v8 = vmul.f32 %v1438_v23, %v806_v3 }
 0x1ee   : > { %v807_v9 = vmax.f32 %v758_v5, 0.0  ;;  %861 = vadd.xlane.f32.xlu0 %v832_v8 }
 0x1ef   : > { %v762_v10 = vpop.f32.mrb[10].mxu1 }
 0x1f0   : > { %v763_v11 = vadd.f32 %v1432_v14, %v762_v10  ;;  %v764_v12 = vpop.f32.mrb[11].mxu1  ;;  %v833_v15 = vmul.f32 %v1438_v23, %v807_v9 }
 0x1f2   : > { %v808_v7 = vmax.f32 %v763_v11, 0.0  ;;  %863 = vadd.xlane.f32.xlu1 %v833_v15 }
 0x1f3   : > { %v767_v16 = vpop.f32.mrb[12].mxu1 }
 0x1f4   : > { %v768_v24 = vadd.f32 %v1432_v14, %v767_v16  ;;  %v769_v17 = vpop.f32.mrb[13].mxu1  ;;  %v834_v18 = vmul.f32 %v1438_v23, %v808_v7 }
 0x1f6   : > { %v809_v19 = vmax.f32 %v768_v24, 0.0  ;;  %865 = vadd.xlane.f32.xlu0 %v834_v18 }
 0x1f7   : > { %v772_v20 = vpop.f32.mrb[14].mxu1 }
 0x1f8   : > { %v773_v21 = vadd.f32 %v1432_v14, %v772_v20  ;;  %v774_v22 = vpop.f32.mrb[15].mxu1  ;;  %v835_v25 = vmul.f32 %v1438_v23, %v809_v19 }
 0x1fa   : > { %v810_v26 = vmax.f32 %v773_v21, 0.0  ;;  %867 = vadd.xlane.f32.xlu1 %v835_v25 }
 0x1fb   : > { %v777_v27 = vpop.f32.mrb[16].mxu1 }
 0x1fc   : > { %v778_v13 = vadd.f32 %v1432_v14, %v777_v27  ;;  %v779_v28 = vpop.f32.mrb[17].mxu1  ;;  %v836_v29 = vmul.f32 %v1438_v23, %v810_v26 }
 0x1fe   : > { %v811_v30 = vmax.f32 %v778_v13, 0.0  ;;  %869 = vadd.xlane.f32.xlu0 %v836_v29 }
 0x1ff   : > { %v782_v31 = vpop.f32.mrb[18].mxu1 }
 0x200   : > { %v783_v32 = vadd.f32 %v1432_v14, %v782_v31  ;;  %v784_v33 = vpop.f32.mrb[19].mxu1  ;;  %v837_v34 = vmul.f32 %v1438_v23, %v811_v30 }
 0x202   : > { %v812_v35 = vmax.f32 %v783_v32, 0.0  ;;  %871 = vadd.xlane.f32.xlu1 %v837_v34 }
 0x203   : > { %v787_v36 = vpop.f32.mrb[20].mxu1 }
 0x204   : > { %v788_v37 = vadd.f32 %v1432_v14, %v787_v36  ;;  %v789_v38 = vpop.f32.mrb[21].mxu1  ;;  %v838_v39 = vmul.f32 %v1438_v23, %v812_v35 }
 0x206   : > { %v813_v40 = vmax.f32 %v788_v37, 0.0  ;;  %873 = vadd.xlane.f32.xlu0 %v838_v39 }
 0x207   : > { %v792_v41 = vpop.f32.mrb[22].mxu1 }
 0x208   : > { %v793_v42 = vadd.f32 %v1432_v14, %v792_v41  ;;  %v794_v43 = vpop.f32.mrb[23].mxu1  ;;  %v839_v44 = vmul.f32 %v1438_v23, %v813_v40 }
 0x20a   : > { %v814_v45 = vmax.f32 %v793_v42, 0.0  ;;  %875 = vadd.xlane.f32.xlu1 %v839_v44 }
 0x20c   : > { %v840_v46 = vmul.f32 %v1438_v23, %v814_v45 }
 0x20e   : > { %877 = vadd.xlane.f32.xlu0 %v840_v46 }
 0x253   : > { %v842_v14 = vpop.xlane.xlu0 %841 }
 0x254   : > { %v881_v48 = vadd.f32 %v880_v47, %v842_v14 }
 0x256   : > { %901 = vst.msk [vmem:[%s1482_s15] sm:$0xff] %vm900_vm1, %v881_v48 }
 0x257   : > { %v844_v23 = vpop.xlane.xlu0 %843 }
 0x258   : > { %v882_v49 = vadd.f32 %v880_v47, %v844_v23 }
 0x25a   : > { %902 = vst.msk [vmem:[%s1482_s15 + $0x8] sm:$0xff] %vm900_vm1, %v882_v49 }
 0x25b   : > { %v846_v50 = vpop.xlane.xlu1 %845 }
 0x25c   : > { %v883_v51 = vadd.f32 %v880_v47, %v846_v50 }
 0x25e   : > { %903 = vst.msk [vmem:[%s1482_s15 + $0x10] sm:$0xff] %vm900_vm1, %v883_v51 }
 0x25f   : > { %v848_v52 = vpop.xlane.xlu1 %847 }
 0x260   : > { %v884_v53 = vadd.f32 %v880_v47, %v848_v52 }
 0x262   : > { %904 = vst.msk [vmem:[%s1482_s15 + $0x18] sm:$0xff] %vm900_vm1, %v884_v53 }
 0x263   : > { %v850_v54 = vpop.xlane.xlu0 %849 }
 0x264   : > { %v885_v55 = vadd.f32 %v880_v47, %v850_v54 }
 0x266   : > { %905 = vst.msk [vmem:[%s1482_s15 + $0x20] sm:$0xff] %vm900_vm1, %v885_v55 }
 0x267   : > { %v852_v56 = vpop.xlane.xlu1 %851 }
 0x268   : > { %v886_v57 = vadd.f32 %v880_v47, %v852_v56 }
 0x26a   : > { %906 = vst.msk [vmem:[%s1482_s15 + $0x28] sm:$0xff] %vm900_vm1, %v886_v57 }
 0x26b   : > { %v854_v58 = vpop.xlane.xlu0 %853 }
 0x26c   : > { %v887_v59 = vadd.f32 %v880_v47, %v854_v58 }
 0x26e   : > { %907 = vst.msk [vmem:[%s1482_s15 + $0x30] sm:$0xff] %vm900_vm1, %v887_v59 }
 0x26f   : > { %v856_v60 = vpop.xlane.xlu1 %855 }
 0x270   : > { %v888_v61 = vadd.f32 %v880_v47, %v856_v60 }
 0x272   : > { %908 = vst.msk [vmem:[%s1482_s15 + $0x38] sm:$0xff] %vm900_vm1, %v888_v61 }
 0x273   : > { %v858_v62 = vpop.xlane.xlu0 %857 }
 0x274   : > { %v889_v63 = vadd.f32 %v880_v47, %v858_v62 }
 0x276   : > { %909 = vst.msk [vmem:[%s1482_s15 + $0x40] sm:$0xff] %vm900_vm1, %v889_v63 }
 0x277   : > { %v860_v0 = vpop.xlane.xlu1 %859 }
 0x278   : > { %v890_v1 = vadd.f32 %v880_v47, %v860_v0 }
 0x27a   : > { %910 = vst.msk [vmem:[%s1482_s15 + $0x48] sm:$0xff] %vm900_vm1, %v890_v1 }
 0x27b   : > { %v862_v2 = vpop.xlane.xlu0 %861 }
 0x27c   : > { %v891_v3 = vadd.f32 %v880_v47, %v862_v2 }
 0x27e   : > { %911 = vst.msk [vmem:[%s1482_s15 + $0x50] sm:$0xff] %vm900_vm1, %v891_v3 }
 0x27f   : > { %v864_v4 = vpop.xlane.xlu1 %863 }
 0x280   : > { %v892_v5 = vadd.f32 %v880_v47, %v864_v4 }
 0x282   : > { %912 = vst.msk [vmem:[%s1482_s15 + $0x58] sm:$0xff] %vm900_vm1, %v892_v5 }
 0x283   : > { %v866_v6 = vpop.xlane.xlu0 %865 }
 0x284   : > { %v893_v8 = vadd.f32 %v880_v47, %v866_v6 }
 0x286   : > { %913 = vst.msk [vmem:[%s1482_s15 + $0x60] sm:$0xff] %vm900_vm1, %v893_v8 }
 0x287   : > { %v868_v9 = vpop.xlane.xlu1 %867 }
 0x288   : > { %v894_v10 = vadd.f32 %v880_v47, %v868_v9 }
 0x28a   : > { %914 = vst.msk [vmem:[%s1482_s15 + $0x68] sm:$0xff] %vm900_vm1, %v894_v10 }
 0x28b   : > { %v870_v11 = vpop.xlane.xlu0 %869 }
 0x28c   : > { %v895_v12 = vadd.f32 %v880_v47, %v870_v11 }
 0x28e   : > { %915 = vst.msk [vmem:[%s1482_s15 + $0x70] sm:$0xff] %vm900_vm1, %v895_v12 }
 0x28f   : > { %v872_v15 = vpop.xlane.xlu1 %871 }
 0x290   : > { %v896_v7 = vadd.f32 %v880_v47, %v872_v15 }
 0x292   : > { %916 = vst.msk [vmem:[%s1482_s15 + $0x78] sm:$0xff] %vm900_vm1, %v896_v7 }
 0x293   : > { %v874_v16 = vpop.xlane.xlu0 %873 }
 0x294   : > { %v897_v24 = vadd.f32 %v880_v47, %v874_v16 }
 0x296   : > { %917 = vst.msk [vmem:[%s1482_s15 + $0x80] sm:$0xff] %vm900_vm1, %v897_v24 }
 0x297   : > { %v876_v17 = vpop.xlane.xlu1 %875 }
 0x298   : > { %v898_v18 = vadd.f32 %v880_v47, %v876_v17 }
 0x29a   : > { %918 = vst.msk [vmem:[%s1482_s15 + $0x88] sm:$0xff] %vm900_vm1, %v898_v18 }
 0x29b   : > { %v878_v19 = vpop.xlane.xlu0 %877 }
 0x29c   : > { %v899_v20 = vadd.f32 %v880_v47, %v878_v19 }
 0x29e   : > { %919 = vst.msk [vmem:[%s1482_s15 + $0x90] sm:$0xff] %vm900_vm1, %v899_v20 }
 0x29f PF: > { %s18_s26 = sadd.s32 1, %s1110_s26  }
 0x2a0   : > { %p15_p4 = scmp.ge.s32.totalorder %s18_s26, 4  }
 0x2a2   :  { %17 = sbr.rel (!%p15_p4) target bundleno = 2 (0x2), region = 78 }

</bundles_post_ra>
